<compile_context>
chip_gen: v7x
topology: tpu7x:2x2x1
jax: 0.10.0
libtpu: 0.0.40
codegen_flags: <defaults>
</compile_context>

<pallas_src>
import jax
import jax.numpy as jnp
from jax.experimental import pallas as pl
from jax.experimental.pallas import tpu as pltpu

IN_FEATURES = 1280
OUT_FEATURES = 20
PADDED_OUT = 128          # lane-dense output width (one full vreg lane dim)


def _round_up(n, m):
    return ((n + m - 1) // m) * m


def linear_logsoftmax_kernel(x_ref, w_ref, b_ref, o_ref):
    # MXU matmul with f32 accumulation; bias add in f32.  Padded weight columns
    # are 0 and padded bias lanes are -inf, so padded logits come out -inf with
    # no in-kernel masking (they contribute exp(-inf)=0 to the normalizer).
    logits = jnp.dot(x_ref[...].astype(w_ref.dtype), w_ref[...],
                     preferred_element_type=jnp.float32) + b_ref[...]
    # Numerically-stable log-softmax over the last dim.
    m = jnp.max(logits, axis=-1, keepdims=True)
    shifted = logits - m
    lse = jnp.log(jnp.sum(jnp.exp(shifted), axis=-1, keepdims=True))
    # Full 128-lane store (unmasked vst); padded lanes hold -inf.
    o_ref[...] = (shifted - lse).astype(o_ref.dtype)


def prepare_params(weight, bias, compute_dtype=jnp.float32):
    """One-time transform of torch-layout Linear params (hoisted out of forward).

    weight (20, 1280), bias (20,) ->
      w_pad (1280, 128) in compute_dtype (zero-padded columns),
      b_pad (1, 128) f32 with -inf in padding lanes (encodes the softmax mask).
    """
    w_pad = jnp.zeros((IN_FEATURES, PADDED_OUT), compute_dtype)
    w_pad = w_pad.at[:, :OUT_FEATURES].set(weight.T.astype(compute_dtype))
    b_pad = jnp.full((1, PADDED_OUT), -jnp.inf, jnp.float32)
    b_pad = b_pad.at[:, :OUT_FEATURES].set(
        bias.reshape(1, OUT_FEATURES).astype(jnp.float32))
    return w_pad, b_pad


def linear_model_forward(x, w_pad, b_pad, *, block_b=512, out_dtype=jnp.float32,
                         slice_output=True):
    """x: (B, 1280) f32/bf16, w_pad/b_pad from prepare_params ->
    log_softmax(x @ weight.T + bias, axis=1), shape (B, 20) (or (B, 128) padded
    slab with -inf in lanes >= 20 when slice_output=False)."""
    B = x.shape[0]
    assert x.shape[1] == IN_FEATURES

    # Batch tile: multiple of 8 (16 for bf16 sublane packing), capped at
    # block_b, and chosen so the grid has >= 2 steps whenever the batch allows
    # it (keeps both v7x TensorCores busy).
    mult = 16 if x.dtype == jnp.bfloat16 else 8
    eff_block = max(mult, min(block_b, _round_up(pl.cdiv(B, 2), mult)))
    grid_b = pl.cdiv(B, eff_block)
    # NOTE: no batch padding of x — Pallas handles the ragged tail block
    # (garbage padding rows are row-independent; the tail output store is clipped).

    out = pl.pallas_call(
        linear_logsoftmax_kernel,
        out_shape=jax.ShapeDtypeStruct((B, PADDED_OUT), out_dtype),
        grid_spec=pltpu.PrefetchScalarGridSpec(
            num_scalar_prefetch=0,
            grid=(grid_b,),
            in_specs=[
                # x: streamed per batch tile (the only HBM-heavy operand).
                pl.BlockSpec((eff_block, IN_FEATURES), lambda i: (i, 0)),
                # weight/bias: constant block index -> VMEM-resident, no re-DMA.
                pl.BlockSpec((IN_FEATURES, PADDED_OUT), lambda i: (0, 0)),
                pl.BlockSpec((1, PADDED_OUT), lambda i: (0, 0)),
            ],
            out_specs=pl.BlockSpec((eff_block, PADDED_OUT), lambda i: (i, 0)),
        ),
        compiler_params=pltpu.CompilerParams(
            dimension_semantics=("parallel",),
            vmem_limit_bytes=32 * 1024 * 1024),
    )(x, w_pad, b_pad)

    if slice_output:
        return out[:, :OUT_FEATURES]
    return out  # (B, 128); lanes >= OUT_FEATURES hold -inf


def reference_forward(x, weight, bias):
    logits = x.astype(jnp.float32) @ weight.T + bias
    return jax.nn.log_softmax(logits, axis=1)


if __name__ == "__main__":
    key = jax.random.PRNGKey(0)
    kw, kb, kx1, kx2, kx3 = jax.random.split(key, 5)

    # Deterministic parameter init mimicking torch.nn.Linear default
    # (uniform in [-1/sqrt(fan_in), 1/sqrt(fan_in)]).
    bound = 1.0 / jnp.sqrt(jnp.float32(IN_FEATURES))
    weight = jax.random.uniform(kw, (OUT_FEATURES, IN_FEATURES),
                                minval=-bound, maxval=bound, dtype=jnp.float32)
    bias = jax.random.uniform(kb, (OUT_FEATURES,),
                              minval=-bound, maxval=bound, dtype=jnp.float32)

    # Params transformed once and reused across all forward calls.
    w_f32, b_f32 = prepare_params(weight, bias, compute_dtype=jnp.float32)
    w_bf16, b_bf16 = prepare_params(weight, bias, compute_dtype=jnp.bfloat16)

    # Case 1: small aligned batch, f32 path (tight tolerance).
    x1 = jax.random.normal(kx1, (8, IN_FEATURES), dtype=jnp.float32)
    out1 = jax.block_until_ready(linear_model_forward(x1, w_f32, b_f32))
    ref1 = reference_forward(x1, weight, bias)
    assert out1.shape == (8, OUT_FEATURES)
    assert jnp.allclose(out1, ref1, atol=1e-5, rtol=1e-5)

    # Case 2: ragged batch exercising the partial (clipped) tail block — no jnp.pad copy.
    x2 = jax.random.normal(kx2, (13, IN_FEATURES), dtype=jnp.float32)
    out2 = jax.block_until_ready(linear_model_forward(x2, w_f32, b_f32))
    ref2 = reference_forward(x2, weight, bias)
    assert out2.shape == (13, OUT_FEATURES)
    assert jnp.allclose(out2, ref2, atol=1e-5, rtol=1e-5)

    # Case 3: bf16 streaming path (halves HBM read bytes of the dominant operand),
    # f32 accumulation on the MXU; compared to the f32 reference with bf16 tolerance.
    x3 = jax.random.normal(kx3, (64, IN_FEATURES), dtype=jnp.float32)
    out3 = jax.block_until_ready(
        linear_model_forward(x3.astype(jnp.bfloat16), w_bf16, b_bf16))
    ref3 = reference_forward(x3, weight, bias)
    assert out3.shape == (64, OUT_FEATURES)
    assert jnp.allclose(out3, ref3, atol=3e-2, rtol=3e-2)

    print("KERNEL_OK")
</pallas_src>

<mosaic_0001>
module attributes {stable_mosaic.version = 11 : i64} {
  func.func @linear_logsoftmax_kernel(%arg0: i32, %arg1: memref<8x1280xf32, #tpu.memory_space<vmem>>, %arg2: memref<1280x128xf32, #tpu.memory_space<vmem>>, %arg3: memref<1x128xf32, #tpu.memory_space<vmem>>, %arg4: memref<8x128xf32, #tpu.memory_space<vmem>>) attributes {dimension_semantics = [#tpu.dimension_semantics<parallel>], iteration_bounds = array<i64: 1>, scalar_prefetch = 0 : i64, scratch_operands = 0 : i64, tpu.core_type = #tpu.core_type<tc>, window_params = [{transform_indices = @transform_0, window_bounds = array<i64: 8, 1280>}, {pipeline_mode = #tpu.pipeline_mode<synchronous>, transform_indices = @transform_1, window_bounds = array<i64: 1280, 128>}, {pipeline_mode = #tpu.pipeline_mode<synchronous>, transform_indices = @transform_2, window_bounds = array<i64: 1, 128>}, {transform_indices = @transform_3, window_bounds = array<i64: 8, 128>}]} {
    %c0 = arith.constant 0 : index
    %c0_0 = arith.constant 0 : index
    %0 = vector.load %arg1[%c0, %c0_0] : memref<8x1280xf32, #tpu.memory_space<vmem>>, vector<8x1280xf32>
    %c0_1 = arith.constant 0 : index
    %c0_2 = arith.constant 0 : index
    %1 = vector.load %arg2[%c0_1, %c0_2] : memref<1280x128xf32, #tpu.memory_space<vmem>>, vector<1280x128xf32>
    %cst = arith.constant dense<0.000000e+00> : vector<8x128xf32>
    %2 = tpu.matmul %0, %1, %cst {dimension_numbers = #tpu.dot_dimension_numbers<[1], [0], [0], [1], [0, 0, 1, 1], [], []>} : vector<8x1280xf32>, vector<1280x128xf32>, vector<8x128xf32> -> vector<8x128xf32>
    %c0_3 = arith.constant 0 : index
    %c0_4 = arith.constant 0 : index
    %3 = vector.load %arg3[%c0_3, %c0_4] : memref<1x128xf32, #tpu.memory_space<vmem>>, vector<1x128xf32>
    %4 = vector.broadcast %3 : vector<1x128xf32> to vector<8x128xf32>
    %5 = arith.addf %2, %4 : vector<8x128xf32>
    %cst_5 = arith.constant dense<0xFF800000> : vector<8xf32>
    %6 = vector.multi_reduction <maximumf>, %5, %cst_5 [1] : vector<8x128xf32> to vector<8xf32>
    %7 = vector.shape_cast %6 : vector<8xf32> to vector<8x1xf32>
    %8 = vector.broadcast %7 : vector<8x1xf32> to vector<8x128xf32>
    %9 = arith.subf %5, %8 : vector<8x128xf32>
    %10 = math.exp %9 : vector<8x128xf32>
    %cst_6 = arith.constant dense<0.000000e+00> : vector<8xf32>
    %11 = vector.multi_reduction <add>, %10, %cst_6 [1] : vector<8x128xf32> to vector<8xf32>
    %12 = vector.shape_cast %11 : vector<8xf32> to vector<8x1xf32>
    %13 = math.log %12 : vector<8x1xf32>
    %14 = vector.broadcast %13 : vector<8x1xf32> to vector<8x128xf32>
    %15 = arith.subf %9, %14 : vector<8x128xf32>
    %c0_7 = arith.constant 0 : index
    %c0_8 = arith.constant 0 : index
    %16 = vector.load %arg4[%c0_7, %c0_8] : memref<8x128xf32, #tpu.memory_space<vmem>>, vector<8x128xf32>
    tpu.vector_store %arg4[%c0_7, %c0_8], %15 {strides = array<i32>} : memref<8x128xf32, #tpu.memory_space<vmem>>, vector<8x128xf32>,
    return
  }
  func.func @transform_0(%arg0: i32) -> (i32, i32) {
    %c0_i32 = arith.constant 0 : i32
    %c0_i32_0 = arith.constant 0 : i32
    return %arg0, %c0_i32 : i32, i32
  }
  func.func @transform_1(%arg0: i32) -> (i32, i32) {
    %c0_i32 = arith.constant 0 : i32
    %c0_i32_0 = arith.constant 0 : i32
    %c0_i32_1 = arith.constant 0 : i32
    return %c0_i32, %c0_i32_0 : i32, i32
  }
  func.func @transform_2(%arg0: i32) -> (i32, i32) {
    %c0_i32 = arith.constant 0 : i32
    %c0_i32_0 = arith.constant 0 : i32
    %c0_i32_1 = arith.constant 0 : i32
    return %c0_i32, %c0_i32_0 : i32, i32
  }
  func.func @transform_3(%arg0: i32) -> (i32, i32) {
    %c0_i32 = arith.constant 0 : i32
    %c0_i32_0 = arith.constant 0 : i32
    return %arg0, %c0_i32 : i32, i32
  }
}

</mosaic_0001>

<bundles_post_ra>
// kernel: tpu_custom_call.1
= control target key start
LH: loop header
LB: loop body
LE: loop exit
PB: predicated region body
PF: predicated region fallthrough
CT: control target
= control target key end

     0   :  { %8 = vsyncpa [#allocation3], 0  ;;  %s1083_s0 = inlined_call_operand.hbm [shape: f32[8,1280], index: 0, kind: input, shape index: {}]   ;;  %s1084_s1 = inlined_call_operand.hbm [shape: f32[1280,128], index: 1, kind: input, shape index: {}]   ;;  %s1085_s2 = inlined_call_operand.vmem [shape: f32[1,128], index: 2, kind: input, shape index: {}]   ;;  %s1086_s3 = inlined_call_operand.hbm [shape: f32[8,128], index: 3, kind: output, shape index: {}]  }
   0x1   :  { %9 = vsyncpa [#allocation6], 0 }
   0x2   :  { %10 = vsyncpa [#allocation4], 0  ;;  %s1012_s12 = smov [#allocation2]   ;;  %s1013_s14 = smov [#allocation5]  }
   0x3   :  { %s17_s13 = sshll.u32 %s1012_s12, 4  ;;  %s26_s15 = sshll.u32 %s1013_s14, 4  ;;  %s18_s13 = int_to_ptr.vmem [resolvable:$true] %s17_s13  ;;  %s1037_s15 = int_to_ptr.vmem [resolvable:$true] %s26_s15 }
   0x4   :  { %s940_s18 = scalar_lea.hbm %s1083_s0, 1280 }
   0x5   :  { %p941_p0 = scmp.ne.s32.totalorder %s1083_s0, %s940_s18  ;;  %p944_p1 = scmp.lt.u32.totalorder %s940_s18, %s1083_s0 }
   0x7   :  { %p946_p2 = pnand %p944_p1, %p941_p0 }
   0x9   :  { %949 = shalt.err (!%p946_p2)
}
   0xa   :  { %s950_s23 = scalar_lea.vmem %s18_s13, 1280  ;;  %p955_p4 = scmp.lt.s32.totalorder %s18_s13, %s18_s13 }
   0xb   :  { %p951_p3 = scmp.ne.s32.totalorder %s18_s13, %s950_s23  ;;  %p956_p5 = scmp.lt.s32.totalorder %s950_s23, %s950_s23 }
   0xd   :  { %p957_p6 = por %p956_p5, %p955_p4 }
   0xf   :  { %p958_p7 = pnand %p957_p6, %p951_p3 }
  0x11   :  { %961 = shalt.err (!%p958_p7)
}
  0x12   :  { %20 = dma.hbm_to_vmem [thread:$0]  %s1083_s0, 1280, %s18_s13, [#allocation3]  }
  0x13   :  { %s962_s28 = scalar_lea.hbm %s1084_s1, 20480 }
  0x14   :  { %p963_p8 = scmp.ne.s32.totalorder %s1084_s1, %s962_s28  ;;  %p966_p9 = scmp.lt.u32.totalorder %s962_s28, %s1084_s1 }
  0x16   :  { %p968_p10 = pnand %p966_p9, %p963_p8 }
  0x18   :  { %971 = shalt.err (!%p968_p10)
}
  0x19   :  { %s972_s6 = scalar_lea.vmem %s1037_s15, 20480  ;;  %p977_p12 = scmp.lt.s32.totalorder %s1037_s15, %s1037_s15 }
  0x1a   :  { %p973_p11 = scmp.ne.s32.totalorder %s1037_s15, %s972_s6  ;;  %p978_p13 = scmp.lt.s32.totalorder %s972_s6, %s972_s6 }
  0x1c   :  { %p979_p0 = por %p978_p13, %p977_p12 }
  0x1e   :  { %p980_p1 = pnand %p979_p0, %p973_p11 }
  0x20   :  { %983 = shalt.err (!%p980_p1)
}
  0x21   :  { %s1014_s0 = smov 128   ;;  %s1015_s7 = smov 8  }
  0x22   :  { %32 = dma.hbm_to_vmem [thread:$0]  %s1084_s1, 20480, %s1037_s15, [#allocation6], %s1014_s0, %s1014_s0, %s1015_s7  }
  0x23   :  { %1006 = dma.done.wait [#allocation3], 1280  }
  0x24   :  { %1007 = vsyncadd [#allocation3], 4294966016 }
  0x25   :  { %1008 = dma.done.wait [#allocation6], 20480  }
  0x26   :  { %1009 = vsyncadd [#allocation6], 4294946816  ;;  %v67_v0 = vld [vmem:[#allocation5 + $0x80] sm:$0xff]  ;;  %v68_v1 = vld [vmem:[#allocation5 + $0x88] sm:$0xff] }
  0x27   :  { %v51_v2 = vld [vmem:[#allocation5] sm:$0xff]  ;;  %v771_v3 = vpack.c.bf16 %v68_v1, %v67_v0  ;;  %v52_v4 = vld [vmem:[#allocation5 + $0x8] sm:$0xff]  ;;  %v69_v11 = vld [vmem:[#allocation5 + $0x90] sm:$0xff] }
  0x28   :  { %v99_v5 = vld [vmem:[#allocation5 + $0x180] sm:$0xff]  ;;  %v100_v6 = vld [vmem:[#allocation5 + $0x188] sm:$0xff]  ;;  %v773_v7 = vpack.c.bf16 %v52_v4, %v51_v2  ;;  %v70_v13 = vld [vmem:[#allocation5 + $0x98] sm:$0xff] }
  0x29   :  { %v803_v8 = vpack.c.bf16 %v100_v6, %v99_v5  ;;  %v83_v9 = vld [vmem:[#allocation5 + $0x100] sm:$0xff]  ;;  %v84_v10 = vld [vmem:[#allocation5 + $0x108] sm:$0xff]  ;;  %772 = vmatprep.subr.bf16.mxu0 %v771_v3  ;;  %v53_v14 = vld [vmem:[#allocation5 + $0x10] sm:$0xff]  ;;  %v775_v16 = vpack.c.bf16 %v70_v13, %v69_v11 }
  0x2a   :  { %v805_v12 = vpack.c.bf16 %v84_v10, %v83_v9  ;;  %v54_v15 = vld [vmem:[#allocation5 + $0x18] sm:$0xff]  ;;  %774 = vmatpush3.bf16.msra.mxu0 %v773_v7  ;;  %v101_v18 = vld [vmem:[#allocation5 + $0x190] sm:$0xff]  ;;  %v71_v23 = vld [vmem:[#allocation5 + $0xa0] sm:$0xff] }
  0x2b   :  { %804 = vmatprep.subr.bf16.mxu1 %v803_v8  ;;  %v777_v17 = vpack.c.bf16 %v54_v15, %v53_v14  ;;  %v102_v19 = vld [vmem:[#allocation5 + $0x198] sm:$0xff]  ;;  %v85_v20 = vld [vmem:[#allocation5 + $0x110] sm:$0xff]  ;;  %v72_v24 = vld [vmem:[#allocation5 + $0xa8] sm:$0xff]  ;;  %776 = vmatprep.subr.bf16.mxu0 %v775_v16 }
  0x2c   :  { %806 = vmatpush3.bf16.msra.mxu1 %v805_v12  ;;  %v807_v21 = vpack.c.bf16 %v102_v19, %v101_v18  ;;  %v86_v22 = vld [vmem:[#allocation5 + $0x118] sm:$0xff]  ;;  %v779_v26 = vpack.c.bf16 %v72_v24, %v71_v23  ;;  %v55_v27 = vld [vmem:[#allocation5 + $0x20] sm:$0xff]  ;;  %v56_v28 = vld [vmem:[#allocation5 + $0x28] sm:$0xff] }
  0x2d   :  { %v809_v25 = vpack.c.bf16 %v86_v22, %v85_v20  ;;  %v103_v29 = vld [vmem:[#allocation5 + $0x1a0] sm:$0xff]  ;;  %v104_v30 = vld [vmem:[#allocation5 + $0x1a8] sm:$0xff]  ;;  %v781_v33 = vpack.c.bf16 %v56_v28, %v55_v27  ;;  %v73_v35 = vld [vmem:[#allocation5 + $0xb0] sm:$0xff] }
  0x2e   :  { %808 = vmatprep.subr.bf16.mxu1 %v807_v21  ;;  %v87_v31 = vld [vmem:[#allocation5 + $0x120] sm:$0xff]  ;;  %v88_v32 = vld [vmem:[#allocation5 + $0x128] sm:$0xff]  ;;  %778 = vmatpush3.bf16.msra.mxu0 %v777_v17  ;;  %v811_v34 = vpack.c.bf16 %v104_v30, %v103_v29  ;;  %v74_v36 = vld [vmem:[#allocation5 + $0xb8] sm:$0xff] }
  0x2f   :  { %v57_v37 = vld [vmem:[#allocation5 + $0x30] sm:$0xff]  ;;  %780 = vmatprep.subr.bf16.mxu0 %v779_v26  ;;  %v813_v38 = vpack.c.bf16 %v88_v32, %v87_v31  ;;  %v783_v39 = vpack.c.bf16 %v74_v36, %v73_v35  ;;  %v58_v40 = vld [vmem:[#allocation5 + $0x38] sm:$0xff]  ;;  %v75_v46 = vld [vmem:[#allocation5 + $0xc0] sm:$0xff] }
  0x30   :  { %810 = vmatpush3.bf16.msra.mxu1 %v809_v25  ;;  %v105_v41 = vld [vmem:[#allocation5 + $0x1b0] sm:$0xff]  ;;  %v106_v42 = vld [vmem:[#allocation5 + $0x1b8] sm:$0xff]  ;;  %v76_v47 = vld [vmem:[#allocation5 + $0xc8] sm:$0xff]  ;;  %v785_v48 = vpack.c.bf16 %v58_v40, %v57_v37 }
  0x31   :  { %812 = vmatprep.subr.bf16.mxu1 %v811_v34  ;;  %v815_v43 = vpack.c.bf16 %v106_v42, %v105_v41  ;;  %v89_v44 = vld [vmem:[#allocation5 + $0x130] sm:$0xff]  ;;  %v90_v45 = vld [vmem:[#allocation5 + $0x138] sm:$0xff]  ;;  %v107_v49 = vld [vmem:[#allocation5 + $0x1c0] sm:$0xff]  ;;  %v787_v52 = vpack.c.bf16 %v76_v47, %v75_v46 }
  0x32   :  { %782 = vmatpush3.bf16.msra.mxu0 %v781_v33  ;;  %v108_v50 = vld [vmem:[#allocation5 + $0x1c8] sm:$0xff]  ;;  %v817_v51 = vpack.c.bf16 %v90_v45, %v89_v44  ;;  %v59_v53 = vld [vmem:[#allocation5 + $0x40] sm:$0xff]  ;;  %v77_v58 = vld [vmem:[#allocation5 + $0xd0] sm:$0xff] }
  0x33   :  { %784 = vmatprep.subr.bf16.mxu0 %v783_v39  ;;  %v60_v54 = vld [vmem:[#allocation5 + $0x48] sm:$0xff]  ;;  %v91_v55 = vld [vmem:[#allocation5 + $0x140] sm:$0xff]  ;;  %v819_v56 = vpack.c.bf16 %v108_v50, %v107_v49  ;;  %v78_v59 = vld [vmem:[#allocation5 + $0xd8] sm:$0xff] }
  0x34   :  { %814 = vmatpush3.bf16.msra.mxu1 %v813_v38  ;;  %v92_v57 = vld [vmem:[#allocation5 + $0x148] sm:$0xff]  ;;  %v109_v60 = vld [vmem:[#allocation5 + $0x1d0] sm:$0xff]  ;;  %v110_v61 = vld [vmem:[#allocation5 + $0x1d8] sm:$0xff]  ;;  %v789_v62 = vpack.c.bf16 %v60_v54, %v59_v53  ;;  %v791_v0 = vpack.c.bf16 %v78_v59, %v77_v58 }
  0x35   :  { %816 = vmatprep.subr.bf16.mxu1 %v815_v43  ;;  %v821_v63 = vpack.c.bf16 %v92_v57, %v91_v55  ;;  %v61_v1 = vld [vmem:[#allocation5 + $0x50] sm:$0xff]  ;;  %v62_v2 = vld [vmem:[#allocation5 + $0x58] sm:$0xff]  ;;  %v823_v4 = vpack.c.bf16 %v110_v61, %v109_v60  ;;  %v79_v6 = vld [vmem:[#allocation5 + $0xe0] sm:$0xff] }
  0x36   :  { %786 = vmatpush3.bf16.msra.mxu0 %v785_v48  ;;  %v93_v3 = vld [vmem:[#allocation5 + $0x150] sm:$0xff]  ;;  %v94_v5 = vld [vmem:[#allocation5 + $0x158] sm:$0xff]  ;;  %v80_v7 = vld [vmem:[#allocation5 + $0xe8] sm:$0xff]  ;;  %v793_v10 = vpack.c.bf16 %v62_v2, %v61_v1 }
  0x37   :  { %788 = vmatprep.subr.bf16.mxu0 %v787_v52  ;;  %v111_v8 = vld [vmem:[#allocation5 + $0x1e0] sm:$0xff]  ;;  %v112_v9 = vld [vmem:[#allocation5 + $0x1e8] sm:$0xff]  ;;  %v42_v12 = vld [vmem:[#allocation2 + $0x8] sm:$0xff]  ;;  %v825_v13 = vpack.c.bf16 %v94_v5, %v93_v3  ;;  %v795_v14 = vpack.c.bf16 %v80_v7, %v79_v6 }
  0x38   :  { %818 = vmatpush3.bf16.msra.mxu1 %v817_v51  ;;  %v63_v11 = vld [vmem:[#allocation5 + $0x60] sm:$0xff]  ;;  %v64_v15 = vld [vmem:[#allocation5 + $0x68] sm:$0xff]  ;;  %v827_v18 = vpack.c.bf16 %v112_v9, %v111_v8  ;;  %v81_v19 = vld [vmem:[#allocation5 + $0xf0] sm:$0xff]  ;;  %282 = vmatprep.mubr.f32.mxu0 %v42_v12 }
  0x39   :  { %820 = vmatprep.subr.bf16.mxu1 %v819_v56  ;;  %v95_v16 = vld [vmem:[#allocation5 + $0x160] sm:$0xff]  ;;  %v96_v17 = vld [vmem:[#allocation5 + $0x168] sm:$0xff]  ;;  %v82_v20 = vld [vmem:[#allocation5 + $0xf8] sm:$0xff]  ;;  %v797_v24 = vpack.c.bf16 %v64_v15, %v63_v11 }
  0x3a   :  { %790 = vmatpush3.bf16.msra.mxu0 %v789_v62  ;;  %v44_v21 = vld [vmem:[#allocation2 + $0x18] sm:$0xff]  ;;  %v113_v22 = vld [vmem:[#allocation5 + $0x1f0] sm:$0xff]  ;;  %v114_v23 = vld [vmem:[#allocation5 + $0x1f8] sm:$0xff]  ;;  %v829_v25 = vpack.c.bf16 %v96_v17, %v95_v16  ;;  %v799_v26 = vpack.c.bf16 %v82_v20, %v81_v19 }
  0x3b   :  { %792 = vmatprep.subr.bf16.mxu0 %v791_v0  ;;  %352 = vmatprep.mubr.f32.mxu1 %v44_v21  ;;  %v65_v27 = vld [vmem:[#allocation5 + $0x70] sm:$0xff]  ;;  %v66_v28 = vld [vmem:[#allocation5 + $0x78] sm:$0xff]  ;;  %v831_v30 = vpack.c.bf16 %v114_v23, %v113_v22  ;;  %v131_v32 = vld [vmem:[#allocation5 + $0x280] sm:$0xff] }
  0x3c   :  { %822 = vmatpush3.bf16.msra.mxu1 %v821_v63  ;;  %v97_v29 = vld [vmem:[#allocation5 + $0x170] sm:$0xff]  ;;  %v98_v31 = vld [vmem:[#allocation5 + $0x178] sm:$0xff]  ;;  %v132_v33 = vld [vmem:[#allocation5 + $0x288] sm:$0xff]  ;;  %v801_v36 = vpack.c.bf16 %v66_v28, %v65_v27 }
  0x3d   :  { %824 = vmatprep.subr.bf16.mxu1 %v823_v4  ;;  %v163_v34 = vld [vmem:[#allocation5 + $0x380] sm:$0xff]  ;;  %v164_v35 = vld [vmem:[#allocation5 + $0x388] sm:$0xff]  ;;  %v833_v37 = vpack.c.bf16 %v98_v31, %v97_v29  ;;  %v835_v38 = vpack.c.bf16 %v132_v33, %v131_v32  ;;  %v133_v44 = vld [vmem:[#allocation5 + $0x290] sm:$0xff] }
  0x3e   :  { %794 = vmatpush3.bf16.msra.mxu0 %v793_v10  ;;  %v115_v39 = vld [vmem:[#allocation5 + $0x200] sm:$0xff]  ;;  %v116_v40 = vld [vmem:[#allocation5 + $0x208] sm:$0xff]  ;;  %v867_v42 = vpack.c.bf16 %v164_v35, %v163_v34  ;;  %v134_v45 = vld [vmem:[#allocation5 + $0x298] sm:$0xff] }
  0x3f   :  { %796 = vmatprep.subr.bf16.mxu0 %v795_v14  ;;  %v147_v41 = vld [vmem:[#allocation5 + $0x300] sm:$0xff]  ;;  %v148_v43 = vld [vmem:[#allocation5 + $0x308] sm:$0xff]  ;;  %v165_v46 = vld [vmem:[#allocation5 + $0x390] sm:$0xff]  ;;  %v837_v49 = vpack.c.bf16 %v116_v40, %v115_v39  ;;  %v839_v52 = vpack.c.bf16 %v134_v45, %v133_v44 }
  0x40   :  { %826 = vmatpush3.bf16.msra.mxu1 %v825_v13  ;;  %v166_v47 = vld [vmem:[#allocation5 + $0x398] sm:$0xff]  ;;  %v41_v48 = vld [vmem:[#allocation2] sm:$0xff]  ;;  %v43_v50 = vld [vmem:[#allocation2 + $0x10] sm:$0xff]  ;;  %v869_v51 = vpack.c.bf16 %v148_v43, %v147_v41 }
  0x41   :  { %828 = vmatprep.subr.bf16.mxu1 %v827_v18  ;;  %v117_v53 = vld [vmem:[#allocation5 + $0x210] sm:$0xff]  ;;  %v118_v54 = vld [vmem:[#allocation5 + $0x218] sm:$0xff]  ;;  %v871_v56 = vpack.c.bf16 %v166_v47, %v165_v46  ;;  %v135_v58 = vld [vmem:[#allocation5 + $0x2a0] sm:$0xff] }
  0x42   :  { %798 = vmatpush3.bf16.msra.mxu0 %v797_v24  ;;  %v149_v55 = vld [vmem:[#allocation5 + $0x310] sm:$0xff]  ;;  %v150_v57 = vld [vmem:[#allocation5 + $0x318] sm:$0xff]  ;;  %v136_v59 = vld [vmem:[#allocation5 + $0x2a8] sm:$0xff]  ;;  %v841_v62 = vpack.c.bf16 %v118_v54, %v117_v53 }
  0x43   :  { %800 = vmatprep.subr.bf16.mxu0 %v799_v26  ;;  %v167_v60 = vld [vmem:[#allocation5 + $0x3a0] sm:$0xff]  ;;  %v168_v61 = vld [vmem:[#allocation5 + $0x3a8] sm:$0xff]  ;;  %v873_v63 = vpack.c.bf16 %v150_v57, %v149_v55  ;;  %v843_v0 = vpack.c.bf16 %v136_v59, %v135_v58  ;;  %v137_v6 = vld [vmem:[#allocation5 + $0x2b0] sm:$0xff] }
  0x44   :  { %830 = vmatpush3.bf16.msra.mxu1 %v829_v25  ;;  %v119_v1 = vld [vmem:[#allocation5 + $0x220] sm:$0xff]  ;;  %v120_v2 = vld [vmem:[#allocation5 + $0x228] sm:$0xff]  ;;  %v875_v4 = vpack.c.bf16 %v168_v61, %v167_v60  ;;  %v138_v7 = vld [vmem:[#allocation5 + $0x2b8] sm:$0xff] }
  0x45   :  { %832 = vmatprep.subr.bf16.mxu1 %v831_v30  ;;  %v151_v3 = vld [vmem:[#allocation5 + $0x320] sm:$0xff]  ;;  %v152_v5 = vld [vmem:[#allocation5 + $0x328] sm:$0xff]  ;;  %v169_v8 = vld [vmem:[#allocation5 + $0x3b0] sm:$0xff]  ;;  %v845_v10 = vpack.c.bf16 %v120_v2, %v119_v1  ;;  %v847_v12 = vpack.c.bf16 %v138_v7, %v137_v6 }
  0x46   :  { %802 = vmatpush3.bf16.msra.mxu0 %v801_v36  ;;  %v170_v9 = vld [vmem:[#allocation5 + $0x3b8] sm:$0xff]  ;;  %v877_v11 = vpack.c.bf16 %v152_v5, %v151_v3  ;;  %v121_v13 = vld [vmem:[#allocation5 + $0x230] sm:$0xff]  ;;  %v139_v18 = vld [vmem:[#allocation5 + $0x2c0] sm:$0xff] }
  0x47   :  { %836 = vmatprep.subr.bf16.mxu0 %v835_v38  ;;  %v122_v14 = vld [vmem:[#allocation5 + $0x238] sm:$0xff]  ;;  %v153_v15 = vld [vmem:[#allocation5 + $0x330] sm:$0xff]  ;;  %v879_v16 = vpack.c.bf16 %v170_v9, %v169_v8  ;;  %v140_v19 = vld [vmem:[#allocation5 + $0x2c8] sm:$0xff] }
  0x48   :  { %834 = vmatpush3.bf16.msra.mxu1 %v833_v37  ;;  %v154_v17 = vld [vmem:[#allocation5 + $0x338] sm:$0xff]  ;;  %v171_v20 = vld [vmem:[#allocation5 + $0x3c0] sm:$0xff]  ;;  %v172_v21 = vld [vmem:[#allocation5 + $0x3c8] sm:$0xff]  ;;  %v849_v23 = vpack.c.bf16 %v122_v14, %v121_v13  ;;  %v851_v26 = vpack.c.bf16 %v140_v19, %v139_v18 }
  0x49   :  { %868 = vmatprep.subr.bf16.mxu1 %v867_v42  ;;  %283 = vmatmul.mubr.f32.vlgmr.msra.gmra.mrb[0].mxu0 %v41_v48  ;;  %v46_v22 = vld [vmem:[#allocation2 + $0x28] sm:$0xff]  ;;  %v123_v24 = vld [vmem:[#allocation5 + $0x240] sm:$0xff]  ;;  %v881_v25 = vpack.c.bf16 %v154_v17, %v153_v15  ;;  %v124_v27 = vld [vmem:[#allocation5 + $0x248] sm:$0xff]  ;;  %v883_v30 = vpack.c.bf16 %v172_v21, %v171_v20 }
  0x4a   :  { %838 = vmatpush3.bf16.msra.mxu0 %v837_v49  ;;  %422 = vmatprep.mubr.f32.mxu0 %v46_v22  ;;  %v155_v28 = vld [vmem:[#allocation5 + $0x340] sm:$0xff]  ;;  %v48_v29 = vld [vmem:[#allocation2 + $0x38] sm:$0xff]  ;;  %v141_v32 = vld [vmem:[#allocation5 + $0x2d0] sm:$0xff]  ;;  %v853_v36 = vpack.c.bf16 %v124_v27, %v123_v24 }
  0x4b   :  { %353 = vmatmul.mubr.f32.vlgmr.msra.gmra.mrb[0].mxu1 %v43_v50  ;;  %840 = vmatprep.subr.bf16.mxu0 %v839_v52  ;;  %v156_v31 = vld [vmem:[#allocation5 + $0x348] sm:$0xff]  ;;  %v142_v33 = vld [vmem:[#allocation5 + $0x2d8] sm:$0xff]  ;;  %v173_v34 = vld [vmem:[#allocation5 + $0x3d0] sm:$0xff] }
  0x4c   :  { %870 = vmatpush3.bf16.msra.mxu1 %v869_v51  ;;  %492 = vmatprep.mubr.f32.mxu1 %v48_v29  ;;  %v174_v35 = vld [vmem:[#allocation5 + $0x3d8] sm:$0xff]  ;;  %v885_v37 = vpack.c.bf16 %v156_v31, %v155_v28  ;;  %v855_v38 = vpack.c.bf16 %v142_v33, %v141_v32  ;;  %v125_v39 = vld [vmem:[#allocation5 + $0x250] sm:$0xff]  ;;  %v143_v44 = vld [vmem:[#allocation5 + $0x2e0] sm:$0xff] }
  0x4d   :  { %872 = vmatprep.subr.bf16.mxu1 %v871_v56  ;;  %v126_v40 = vld [vmem:[#allocation5 + $0x258] sm:$0xff]  ;;  %v157_v41 = vld [vmem:[#allocation5 + $0x350] sm:$0xff]  ;;  %v887_v42 = vpack.c.bf16 %v174_v35, %v173_v34  ;;  %v144_v45 = vld [vmem:[#allocation5 + $0x2e8] sm:$0xff] }
  0x4e   :  { %842 = vmatpush3.bf16.msra.mxu0 %v841_v62  ;;  %v158_v43 = vld [vmem:[#allocation5 + $0x358] sm:$0xff]  ;;  %v175_v46 = vld [vmem:[#allocation5 + $0x3e0] sm:$0xff]  ;;  %v176_v47 = vld [vmem:[#allocation5 + $0x3e8] sm:$0xff]  ;;  %v857_v48 = vpack.c.bf16 %v126_v40, %v125_v39  ;;  %v859_v50 = vpack.c.bf16 %v144_v45, %v143_v44 }
  0x4f   :  { %844 = vmatprep.subr.bf16.mxu0 %v843_v0  ;;  %v889_v49 = vpack.c.bf16 %v158_v43, %v157_v41  ;;  %v127_v51 = vld [vmem:[#allocation5 + $0x260] sm:$0xff]  ;;  %v128_v52 = vld [vmem:[#allocation5 + $0x268] sm:$0xff]  ;;  %v891_v54 = vpack.c.bf16 %v176_v47, %v175_v46  ;;  %v145_v56 = vld [vmem:[#allocation5 + $0x2f0] sm:$0xff] }
  0x50   :  { %874 = vmatpush3.bf16.msra.mxu1 %v873_v63  ;;  %v159_v53 = vld [vmem:[#allocation5 + $0x360] sm:$0xff]  ;;  %v160_v55 = vld [vmem:[#allocation5 + $0x368] sm:$0xff]  ;;  %v146_v57 = vld [vmem:[#allocation5 + $0x2f8] sm:$0xff]  ;;  %v861_v60 = vpack.c.bf16 %v128_v52, %v127_v51 }
  0x51   :  { %876 = vmatprep.subr.bf16.mxu1 %v875_v4  ;;  %v177_v58 = vld [vmem:[#allocation5 + $0x3f0] sm:$0xff]  ;;  %v178_v59 = vld [vmem:[#allocation5 + $0x3f8] sm:$0xff]  ;;  %v893_v61 = vpack.c.bf16 %v160_v55, %v159_v53  ;;  %v863_v62 = vpack.c.bf16 %v146_v57, %v145_v56  ;;  %v195_v4 = vld [vmem:[#allocation5 + $0x480] sm:$0xff] }
  0x52   :  { %846 = vmatpush3.bf16.msra.mxu0 %v845_v10  ;;  %v129_v63 = vld [vmem:[#allocation5 + $0x270] sm:$0xff]  ;;  %v130_v0 = vld [vmem:[#allocation5 + $0x278] sm:$0xff]  ;;  %v895_v2 = vpack.c.bf16 %v178_v59, %v177_v58  ;;  %v196_v5 = vld [vmem:[#allocation5 + $0x488] sm:$0xff] }
  0x53   :  { %848 = vmatprep.subr.bf16.mxu0 %v847_v12  ;;  %v161_v1 = vld [vmem:[#allocation5 + $0x370] sm:$0xff]  ;;  %v162_v3 = vld [vmem:[#allocation5 + $0x378] sm:$0xff]  ;;  %v865_v6 = vpack.c.bf16 %v130_v0, %v129_v63  ;;  %v899_v8 = vpack.c.bf16 %v196_v5, %v195_v4  ;;  %v179_v9 = vld [vmem:[#allocation5 + $0x400] sm:$0xff] }
  0x54   :  { %878 = vmatpush3.bf16.msra.mxu1 %v877_v11  ;;  %v897_v7 = vpack.c.bf16 %v162_v3, %v161_v1  ;;  %v180_v10 = vld [vmem:[#allocation5 + $0x408] sm:$0xff]  ;;  %v197_v11 = vld [vmem:[#allocation5 + $0x490] sm:$0xff]  ;;  %v198_v12 = vld [vmem:[#allocation5 + $0x498] sm:$0xff] }
  0x55   :  { %880 = vmatprep.subr.bf16.mxu1 %v879_v16  ;;  %v45_v13 = vld [vmem:[#allocation2 + $0x20] sm:$0xff]  ;;  %v901_v14 = vpack.c.bf16 %v180_v10, %v179_v9  ;;  %v47_v15 = vld [vmem:[#allocation2 + $0x30] sm:$0xff]  ;;  %v903_v16 = vpack.c.bf16 %v198_v12, %v197_v11  ;;  %v182_v18 = vld [vmem:[#allocation5 + $0x418] sm:$0xff] }
  0x56   :  { %850 = vmatpush3.bf16.msra.mxu0 %v849_v23  ;;  %v181_v17 = vld [vmem:[#allocation5 + $0x410] sm:$0xff]  ;;  %v199_v19 = vld [vmem:[#allocation5 + $0x4a0] sm:$0xff]  ;;  %v200_v20 = vld [vmem:[#allocation5 + $0x4a8] sm:$0xff] }
  0x57   :  { %852 = vmatprep.subr.bf16.mxu0 %v851_v26  ;;  %v50_v21 = vld [vmem:[#allocation2 + $0x48] sm:$0xff]  ;;  %v905_v22 = vpack.c.bf16 %v182_v18, %v181_v17  ;;  %v907_v23 = vpack.c.bf16 %v200_v20, %v199_v19  ;;  %v183_v24 = vld [vmem:[#allocation5 + $0x420] sm:$0xff]  ;;  %v201_v26 = vld [vmem:[#allocation5 + $0x4b0] sm:$0xff] }
  0x58   :  { %882 = vmatpush3.bf16.msra.mxu1 %v881_v25  ;;  %v184_v25 = vld [vmem:[#allocation5 + $0x428] sm:$0xff]  ;;  %v202_v27 = vld [vmem:[#allocation5 + $0x4b8] sm:$0xff]  ;;  %v203_v32 = vld [vmem:[#allocation5 + $0x4c0] sm:$0xff] }
  0x59   :  { %884 = vmatprep.subr.bf16.mxu1 %v883_v30  ;;  %v909_v28 = vpack.c.bf16 %v184_v25, %v183_v24  ;;  %v911_v29 = vpack.c.bf16 %v202_v27, %v201_v26  ;;  %v185_v30 = vld [vmem:[#allocation5 + $0x430] sm:$0xff]  ;;  %v186_v31 = vld [vmem:[#allocation5 + $0x438] sm:$0xff]  ;;  %v204_v33 = vld [vmem:[#allocation5 + $0x4c8] sm:$0xff] }
  0x5a   :  { %854 = vmatpush3.bf16.msra.mxu0 %v853_v36  ;;  %v913_v34 = vpack.c.bf16 %v186_v31, %v185_v30  ;;  %v915_v35 = vpack.c.bf16 %v204_v33, %v203_v32  ;;  %v187_v36 = vld [vmem:[#allocation5 + $0x440] sm:$0xff]  ;;  %v206_v39 = vld [vmem:[#allocation5 + $0x4d8] sm:$0xff]  ;;  %v208_v45 = vld [vmem:[#allocation5 + $0x4e8] sm:$0xff] }
  0x5b   :  { %856 = vmatprep.subr.bf16.mxu0 %v855_v38  ;;  %v205_v38 = vld [vmem:[#allocation5 + $0x4d0] sm:$0xff]  ;;  %v190_v43 = vld [vmem:[#allocation5 + $0x458] sm:$0xff]  ;;  %v207_v44 = vld [vmem:[#allocation5 + $0x4e0] sm:$0xff] }
  0x5c   :  { %886 = vmatpush3.bf16.msra.mxu1 %v885_v37  ;;  %v188_v37 = vld [vmem:[#allocation5 + $0x448] sm:$0xff]  ;;  %v919_v41 = vpack.c.bf16 %v206_v39, %v205_v38  ;;  %v923_v47 = vpack.c.bf16 %v208_v45, %v207_v44  ;;  %v210_v51 = vld [vmem:[#allocation5 + $0x4f8] sm:$0xff]  ;;  %v49_v57 = vld [vmem:[#allocation2 + $0x40] sm:$0xff] }
  0x5d   :  { %888 = vmatprep.subr.bf16.mxu1 %v887_v42  ;;  %v917_v40 = vpack.c.bf16 %v188_v37, %v187_v36  ;;  %v189_v42 = vld [vmem:[#allocation5 + $0x450] sm:$0xff]  ;;  %v194_v55 = vld [vmem:[#allocation5 + $0x478] sm:$0xff] }
  0x5e   :  { %858 = vmatpush3.bf16.msra.mxu0 %v857_v48  ;;  %v921_v46 = vpack.c.bf16 %v190_v43, %v189_v42  ;;  %v191_v48 = vld [vmem:[#allocation5 + $0x460] sm:$0xff]  ;;  %v595_v59 = vld [vmem:[%s1085_s2] ss:$0 sm:$0xff]  ;;  %s1016_s2 = smov [#allocation7]  }
  0x5f   :  { %860 = vmatprep.subr.bf16.mxu0 %v859_v50  ;;  %v209_v50 = vld [vmem:[#allocation5 + $0x4f0] sm:$0xff]  ;;  %s585_s11 = sshll.u32 %s1016_s2, 4  ;;  %s586_s11 = int_to_ptr.vmem [resolvable:$true] %s585_s11 }
  0x60   :  { %890 = vmatpush3.bf16.msra.mxu1 %v889_v49  ;;  %v192_v49 = vld [vmem:[#allocation5 + $0x468] sm:$0xff]  ;;  %v927_v53 = vpack.c.bf16 %v210_v51, %v209_v50  ;;  %s984_s12 = scalar_lea.vmem %s586_s11, 128  ;;  %p989_p3 = scmp.lt.s32.totalorder %s586_s11, %s586_s11 }
  0x61   :  { %892 = vmatprep.subr.bf16.mxu1 %v891_v54  ;;  %v925_v52 = vpack.c.bf16 %v192_v49, %v191_v48  ;;  %v193_v54 = vld [vmem:[#allocation5 + $0x470] sm:$0xff]  ;;  %p985_p2 = scmp.ne.s32.totalorder %s586_s11, %s984_s12  ;;  %p990_p4 = scmp.lt.s32.totalorder %s984_s12, %s984_s12 }
  0x62   :  { %862 = vmatpush3.bf16.msra.mxu0 %v861_v60  ;;  %v929_v56 = vpack.c.bf16 %v194_v55, %v193_v54 }
  0x63   :  { %864 = vmatprep.subr.bf16.mxu0 %v863_v62  ;;  %p991_p5 = por %p990_p4, %p989_p3 }
  0x64   :  { %894 = vmatpush3.bf16.msra.mxu1 %v893_v61 }
  0x65   :  { %896 = vmatprep.subr.bf16.mxu1 %v895_v2  ;;  %p992_p6 = pnand %p991_p5, %p985_p2 }
  0x66   :  { %866 = vmatpush3.bf16.msra.mxu0 %v865_v6 }
  0x67   :  { %900 = vmatprep.subr.bf16.mxu0 %v899_v8 }
  0x68   :  { %898 = vmatpush3.bf16.msra.mxu1 %v897_v7 }
  0x69   :  { %423 = vmatmul.mubr.f32.vlgmr.msra.gmra.mrb[2].mxu0 %v45_v13 }
  0x6a   :  { %902 = vmatpush3.bf16.msra.mxu0 %v901_v14  ;;  %562 = vmatprep.mubr.f32.mxu0 %v50_v21 }
  0x6b   :  { %493 = vmatmul.mubr.f32.vlgmr.msra.gmra.mrb[2].mxu1 %v47_v15  ;;  %904 = vmatprep.subr.bf16.mxu0 %v903_v16 }
  0x6e   :  { %906 = vmatpush3.bf16.msra.mxu0 %v905_v22 }
  0x6f   :  { %908 = vmatprep.subr.bf16.mxu0 %v907_v23 }
  0x72   :  { %910 = vmatpush3.bf16.msra.mxu0 %v909_v28 }
  0x73   :  { %912 = vmatprep.subr.bf16.mxu0 %v911_v29 }
  0x76   :  { %914 = vmatpush3.bf16.msra.mxu0 %v913_v34 }
  0x77   :  { %916 = vmatprep.subr.bf16.mxu0 %v915_v35 }
  0x7a   :  { %918 = vmatpush3.bf16.msra.mxu0 %v917_v40 }
  0x7b   :  { %920 = vmatprep.subr.bf16.mxu0 %v919_v41 }
  0x7e   :  { %922 = vmatpush3.bf16.msra.mxu0 %v921_v46 }
  0x7f   :  { %924 = vmatprep.subr.bf16.mxu0 %v923_v47 }
  0x82   :  { %926 = vmatpush3.bf16.msra.mxu0 %v925_v52 }
  0x83   :  { %928 = vmatprep.subr.bf16.mxu0 %v927_v53 }
  0x86   :  { %930 = vmatpush3.bf16.msra.mxu0 %v929_v56 }
  0x89   :  { %563 = vmatmul.mubr.f32.vlgmr.msra.gmra.mrb[4].mxu0 %v49_v57 }
 0x11c   :  { %v628_v58 = vpop.f32.mrb[0].mxu0 }
 0x11d   :  { %v629_v60 = vpop.f32.mrb[1].mxu0 }
 0x11e   :  { %v663_v61 = vpop.f32.mrb[0].mxu1  ;;  %v630_v62 = vadd.f32 %v629_v60, %v628_v58 }
 0x11f   :  { %v664_v63 = vpop.f32.mrb[1].mxu1 }
 0x120   :  { %v665_v0 = vadd.f32 %v664_v63, %v663_v61  ;;  %v285_v1 = vadd.f32 %v630_v62, %v595_v59 }
 0x122   :  { %v355_v2 = vadd.f32 %v665_v0, %v285_v1 }
 0x13c   :  { %v698_v3 = vpop.f32.mrb[2].mxu0 }
 0x13d   :  { %v699_v4 = vpop.f32.mrb[3].mxu0 }
 0x13e   :  { %v733_v5 = vpop.f32.mrb[2].mxu1  ;;  %v700_v6 = vadd.f32 %v699_v4, %v698_v3 }
 0x13f   :  { %v734_v7 = vpop.f32.mrb[3].mxu1 }
 0x140   :  { %v735_v8 = vadd.f32 %v734_v7, %v733_v5  ;;  %v425_v9 = vadd.f32 %v700_v6, %v355_v2 }
 0x142   :  { %v495_v10 = vadd.f32 %v735_v8, %v425_v9 }
 0x15c   :  { %v768_v11 = vpop.f32.mrb[4].mxu0 }
 0x15d   :  { %v769_v12 = vpop.f32.mrb[5].mxu0 }
 0x15e   :  { %v770_v13 = vadd.f32 %v769_v12, %v768_v11 }
 0x160   :  { %v565_v14 = vadd.f32 %v770_v13, %v495_v10 }
 0x162   :  { %568 = vmax.xlane.f32.xlu0 %v565_v14 }
 0x1ef   :  { %v569_v15 = vpop.xlane.xlu0 %568 }
 0x1f0   :  { %v570_v16 = vsub.f32 %v565_v14, %v569_v15 }
 0x1f2   :  { %v571_v17 = vmul.f32 1.442695, %v570_v16 }
 0x1f4   :  { %936 = vpow2.f32 %v571_v17 }
 0x1fe   :  { %v937_v18 = vpop.eup %936 }
 0x1ff   :  { %573 = vadd.xlane.f32.xlu0 %v937_v18 }
 0x28c   :  { %v574_v19 = vpop.xlane.xlu0 %573 }
 0x28d   :  { %938 = vlog2.f32 %v574_v19 }
 0x297   :  { %v939_v20 = vpop.eup %938 }
 0x298   :  { %v576_v21 = vmul.f32 0.6931472, %v939_v20 }
 0x29a   :  { %v577_v22 = vsub.f32 %v570_v16, %v576_v21 }
 0x29c   :  { %578 = vst [vmem:[#allocation7] sm:$0xff] %v577_v22 }
 0x29d   :  { %995 = shalt.err (!%p992_p6)
}
 0x29e   :  { %s996_s15 = scalar_lea.hbm %s1086_s3, 128 }
 0x29f   :  { %p997_p7 = scmp.ne.s32.totalorder %s1086_s3, %s996_s15  ;;  %p1000_p8 = scmp.lt.u32.totalorder %s996_s15, %s1086_s3 }
 0x2a1   :  { %p1002_p9 = pnand %p1000_p8, %p997_p7 }
 0x2a3   :  { %1005 = shalt.err (!%p1002_p9)
}
 0x2a4   :  { %588 = dma.vmem_to_hbm [thread:$0]  %s586_s11, 128, %s1086_s3, [#allocation4]  }
 0x2a5   :  { %1010 = dma.done.wait [#allocation4], 128  }
 0x2a6   :  { %1011 = vsyncadd [#allocation4], 4294967168 }
 0x2a7   :  { %592 = vsyncpa [#allocation3], 1 }
 0x2a8   :  { %593 = vsyncpa [#allocation6], 1 }
 0x2a9   :  { %594 = vsyncpa [#allocation4], 1 }

</bundles_post_ra>
